<compile_context>
chip_gen: v6e
topology: v6e:2x2x1
jax: 0.10.0
libtpu: 0.0.40
codegen_flags: <defaults>
</compile_context>

<pallas_src>
import jax
import jax.numpy as jnp
from jax.experimental import pallas as pl
from jax.experimental.pallas import tpu as pltpu


def _round_up(x, m):
    return (x + m - 1) // m * m


# ---------------------------------------------------------------------------
# Shared gate math (all slices are Dp = multiple-of-128 aligned -> free views).
# Fused gate column order (blocks of width Dp):
#   [ r, z, i, f, o | g | n_i, n_h ]
# ---------------------------------------------------------------------------
def _gate_math(pre, h, c, alpha, Dp):
    # One sigmoid over the contiguous sigmoid-gate region [r, z, i, f, o].
    s = jax.nn.sigmoid(pre[:, 0:5 * Dp])
    r = s[:, 0 * Dp:1 * Dp]
    zg = s[:, 1 * Dp:2 * Dp]
    ig = s[:, 2 * Dp:3 * Dp]
    fg = s[:, 3 * Dp:4 * Dp]
    og = s[:, 4 * Dp:5 * Dp]

    g = jnp.tanh(pre[:, 5 * Dp:6 * Dp])                              # LSTM candidate
    # GRU candidate: n = tanh((W_in x + b_in) + r * (W_hn h + b_hn))
    n = jnp.tanh(pre[:, 6 * Dp:7 * Dp] + r * pre[:, 7 * Dp:8 * Dp])

    h_gru = (1.0 - zg) * n + zg * h
    c_new = fg * c + ig * g
    h_lstm = og * jnp.tanh(c_new)
    h_new = alpha * (h_gru + h_lstm)
    return h_new, c_new


# ---------------------------------------------------------------------------
# Kernels
# ---------------------------------------------------------------------------
def _hybrid_step_kernel(u_ref, h_ref, c_ref, w_ref, b_ref, alpha_ref, out_ref):
    """Single step: one fused bf16 matmul (u = [x|z|h]) + f32 gate math."""
    Dp = h_ref.shape[-1]
    pre = (jnp.dot(u_ref[...], w_ref[...], preferred_element_type=jnp.float32)
           + b_ref[...])                                             # (B, Gp) f32
    h_new, c_new = _gate_math(pre, h_ref[...], c_ref[...], alpha_ref[0, 0], Dp)
    out_ref[0] = h_new
    out_ref[1] = c_new


def _hybrid_scan_kernel(xz_ref, h0_ref, c0_ref, w_xz_ref, w_h_ref, b_ref,
                        alpha_ref, out_ref, h_s, c_s):
    """Time loop inside the kernel: weights VMEM-resident, h/c carried in scratch."""
    Dp = h_s.shape[-1]
    t = pl.program_id(0)

    @pl.when(t == 0)
    def _():
        h_s[...] = h0_ref[...]
        c_s[...] = c0_ref[...]

    h = h_s[...]
    c = c_s[...]
    pre = (jnp.dot(xz_ref[0], w_xz_ref[...], preferred_element_type=jnp.float32)
           + jnp.dot(h.astype(w_h_ref.dtype), w_h_ref[...],
                     preferred_element_type=jnp.float32)
           + b_ref[...])                                             # (B, Gp) f32
    h_new, c_new = _gate_math(pre, h, c, alpha_ref[0, 0], Dp)
    h_s[...] = h_new
    c_s[...] = c_new
    out_ref[0, 0] = h_new
    out_ref[1, 0] = c_new


# ---------------------------------------------------------------------------
# One-time weight fusion / reorder / pad / cast (outside the step path).
# ---------------------------------------------------------------------------
def prepare_params(params, mxu_dtype=jnp.bfloat16):
    """PyTorch layouts:
         gru_w_ih  (3D, 2D) rows [r, z, n]   gru_w_hh  (3D, D)
         lstm_w_ih (4D, 2D) rows [i, f, g, o] lstm_w_hh (4D, D)
       Fused column blocks (width Dp each): [r, z, i, f, o, g, n_i, n_h]."""
    D = params["gru_w_hh"].shape[1]
    Dp = _round_up(D, 128)

    gw_ih, gw_hh = params["gru_w_ih"], params["gru_w_hh"]
    lw_ih, lw_hh = params["lstm_w_ih"], params["lstm_w_hh"]
    gb_ih, gb_hh = params["gru_b_ih"], params["gru_b_hh"]
    lb_ih, lb_hh = params["lstm_b_ih"], params["lstm_b_hh"]

    def gate(w_ih, w_hh, b_ih, b_hh, k):
        rows = slice(k * D, (k + 1) * D)
        return (w_ih[rows, :D].T,          # acts on x   (D, D)
                w_ih[rows, D:2 * D].T,     # acts on z   (D, D)
                w_hh[rows, :].T,           # acts on h   (D, D)
                b_ih[rows], b_hh[rows])

    r = gate(gw_ih, gw_hh, gb_ih, gb_hh, 0)
    zg = gate(gw_ih, gw_hh, gb_ih, gb_hh, 1)
    n = gate(gw_ih, gw_hh, gb_ih, gb_hh, 2)
    i = gate(lw_ih, lw_hh, lb_ih, lb_hh, 0)
    f = gate(lw_ih, lw_hh, lb_ih, lb_hh, 1)
    g = gate(lw_ih, lw_hh, lb_ih, lb_hh, 2)
    o = gate(lw_ih, lw_hh, lb_ih, lb_hh, 3)

    zw = jnp.zeros((D, D), jnp.float32)
    # (w_x, w_z, w_h, bias) per fused gate column block.
    blocks = [
        (r[0], r[1], r[2], r[3] + r[4]),
        (zg[0], zg[1], zg[2], zg[3] + zg[4]),
        (i[0], i[1], i[2], i[3] + i[4]),
        (f[0], f[1], f[2], f[3] + f[4]),
        (o[0], o[1], o[2], o[3] + o[4]),
        (g[0], g[1], g[2], g[3] + g[4]),
        (n[0], n[1], zw, n[3]),     # n_i: input side only, bias b_in
        (zw, zw, n[2], n[4]),       # n_h: hidden side only, bias b_hn
    ]

    def padc(m):  # pad the gate column block from D to Dp lanes
        return jnp.pad(m, ((0, 0), (0, Dp - D)))

    wx = jnp.concatenate([padc(b[0]) for b in blocks], axis=1)          # (D, Gp)
    wz = jnp.concatenate([padc(b[1]) for b in blocks], axis=1)          # (D, Gp)
    wh = jnp.concatenate([padc(b[2]) for b in blocks], axis=1)          # (D, Gp)
    bias = jnp.concatenate([padc(b[3][None, :]) for b in blocks], axis=1)  # (1, Gp)

    prep = {
        # single-step: one fused matmul over u = [x | z | h]
        "w_fused": jnp.concatenate([wx, wz, wh], axis=0).astype(mxu_dtype),   # (3D, Gp)
        # scan: input-side and hidden-side weights (hidden rows padded to Dp)
        "w_xz": jnp.concatenate([wx, wz], axis=0).astype(mxu_dtype),          # (2D, Gp)
        "w_h_pad": jnp.pad(wh, ((0, Dp - D), (0, 0))).astype(mxu_dtype),      # (Dp, Gp)
        "bias": bias.astype(jnp.float32),                                     # (1, Gp)
        "alpha": jnp.asarray(params["alpha"], jnp.float32).reshape(1, 1),     # SMEM
    }
    return jax.tree_util.tree_map(jnp.asarray, prep)


# ---------------------------------------------------------------------------
# Wrappers
# ---------------------------------------------------------------------------
_VMEM = pl.BlockSpec(memory_space=pltpu.MemorySpace.VMEM)
_SMEM = pl.BlockSpec(memory_space=pltpu.MemorySpace.SMEM)


@jax.jit
def hybrid_state_update(x_enc, z_enc, h, c, prep):
    """HybridStateUpdate.forward(x_enc, z_enc, h, c) -> (h_new, c_new)."""
    B, D = h.shape
    Dp = prep["w_h_pad"].shape[0]

    u = jnp.concatenate([x_enc, z_enc, h], axis=-1).astype(jnp.bfloat16)  # (B, 3D)
    h_pad = jnp.pad(h, ((0, 0), (0, Dp - D)))
    c_pad = jnp.pad(c, ((0, 0), (0, Dp - D)))

    out = pl.pallas_call(
        _hybrid_step_kernel,
        out_shape=jax.ShapeDtypeStruct((2, B, Dp), jnp.float32),
        in_specs=[_VMEM] * 5 + [_SMEM],
        out_specs=_VMEM,
    )(u, h_pad, c_pad, prep["w_fused"], prep["bias"], prep["alpha"])

    return out[0, :, :D], out[1, :, :D]


@jax.jit
def hybrid_state_scan(x_seq, z_seq, h0, c0, prep):
    """Apply the hybrid cell over a (T, B, D) sequence with the time loop
    inside the kernel (weights stay VMEM-resident; h/c carried in scratch)."""
    T, B, D = x_seq.shape
    Dp = prep["w_h_pad"].shape[0]
    Gp = prep["bias"].shape[-1]

    xz = jnp.concatenate([x_seq, z_seq], axis=-1).astype(jnp.bfloat16)    # (T, B, 2D)
    h0p = jnp.pad(h0, ((0, 0), (0, Dp - D)))
    c0p = jnp.pad(c0, ((0, 0), (0, Dp - D)))

    cost = pl.CostEstimate(
        flops=int(2 * T * B * (2 * D + Dp) * Gp),
        transcendentals=int(8 * T * B * Dp),
        bytes_accessed=int(T * B * 2 * D * 2 + (2 * D + Dp) * Gp * 2
                           + Gp * 4 + 2 * B * Dp * 4 + 2 * T * B * Dp * 4),
    )

    out = pl.pallas_call(
        _hybrid_scan_kernel,
        out_shape=jax.ShapeDtypeStruct((2, T, B, Dp), jnp.float32),
        grid=(T,),
        in_specs=[
            pl.BlockSpec((1, B, 2 * D), lambda t: (t, 0, 0)),   # x/z streamed per step
            pl.BlockSpec((B, Dp), lambda t: (0, 0)),            # h0 (read at t==0)
            pl.BlockSpec((B, Dp), lambda t: (0, 0)),            # c0 (read at t==0)
            pl.BlockSpec((2 * D, Gp), lambda t: (0, 0)),        # resident weights
            pl.BlockSpec((Dp, Gp), lambda t: (0, 0)),           # resident weights
            pl.BlockSpec((1, Gp), lambda t: (0, 0)),            # resident bias
            _SMEM,                                              # alpha scalar
        ],
        out_specs=pl.BlockSpec((2, 1, B, Dp), lambda t: (0, t, 0, 0)),
        scratch_shapes=[pltpu.VMEM((B, Dp), jnp.float32),       # h carry
                        pltpu.VMEM((B, Dp), jnp.float32)],      # c carry
        compiler_params=pltpu.CompilerParams(
            dimension_semantics=("arbitrary",)),                # recurrent -> sequential
        cost_estimate=cost,
    )(xz, h0p, c0p, prep["w_xz"], prep["w_h_pad"], prep["bias"], prep["alpha"])

    return out[0, :, :, :D], out[1, :, :, :D]


# ---------------------------------------------------------------------------
# Init + references
# ---------------------------------------------------------------------------
def init_params(key, latent_dim):
    """PyTorch-style U(-1/sqrt(H), 1/sqrt(H)) init, PyTorch weight layout."""
    D = latent_dim
    bound = 1.0 / (D ** 0.5)
    ks = jax.random.split(key, 8)

    def u(k, shape):
        return jax.random.uniform(k, shape, jnp.float32, -bound, bound)

    return {
        "gru_w_ih": u(ks[0], (3 * D, 2 * D)), "gru_w_hh": u(ks[1], (3 * D, D)),
        "gru_b_ih": u(ks[2], (3 * D,)), "gru_b_hh": u(ks[3], (3 * D,)),
        "lstm_w_ih": u(ks[4], (4 * D, 2 * D)), "lstm_w_hh": u(ks[5], (4 * D, D)),
        "lstm_b_ih": u(ks[6], (4 * D,)), "lstm_b_hh": u(ks[7], (4 * D,)),
        "alpha": jnp.float32(1.0),
    }


def _reference_step(x_enc, z_enc, h, c, p):
    """Pure-JAX f32 reference of the PyTorch forward."""
    D = h.shape[-1]
    xz = jnp.concatenate([x_enc, z_enc], axis=-1)
    gi = xz @ p["gru_w_ih"].T + p["gru_b_ih"]
    gh = h @ p["gru_w_hh"].T + p["gru_b_hh"]
    r = jax.nn.sigmoid(gi[:, :D] + gh[:, :D])
    z = jax.nn.sigmoid(gi[:, D:2 * D] + gh[:, D:2 * D])
    n = jnp.tanh(gi[:, 2 * D:] + r * gh[:, 2 * D:])
    h_gru = (1 - z) * n + z * h
    g = xz @ p["lstm_w_ih"].T + p["lstm_b_ih"] + h @ p["lstm_w_hh"].T + p["lstm_b_hh"]
    i_g = jax.nn.sigmoid(g[:, :D])
    f_g = jax.nn.sigmoid(g[:, D:2 * D])
    g_g = jnp.tanh(g[:, 2 * D:3 * D])
    o_g = jax.nn.sigmoid(g[:, 3 * D:])
    c_new = f_g * c + i_g * g_g
    h_lstm = o_g * jnp.tanh(c_new)
    return p["alpha"] * h_gru + p["alpha"] * h_lstm, c_new


def _reference_scan_bf16(x_seq, z_seq, h0, c0, p):
    """Step-looped reference that mirrors the kernel's bf16-MXU / f32-math arithmetic."""
    D = h0.shape[-1]
    bf = lambda a: a.astype(jnp.bfloat16)
    gw_ih, gw_hh = bf(p["gru_w_ih"]), bf(p["gru_w_hh"])
    lw_ih, lw_hh = bf(p["lstm_w_ih"]), bf(p["lstm_w_hh"])

    def step(carry, xz):
        h, c = carry
        xzb, hb = bf(xz), bf(h)
        gi = jnp.dot(xzb, gw_ih.T, preferred_element_type=jnp.float32) + p["gru_b_ih"]
        gh = jnp.dot(hb, gw_hh.T, preferred_element_type=jnp.float32) + p["gru_b_hh"]
        r = jax.nn.sigmoid(gi[:, :D] + gh[:, :D])
        z = jax.nn.sigmoid(gi[:, D:2 * D] + gh[:, D:2 * D])
        n = jnp.tanh(gi[:, 2 * D:] + r * gh[:, 2 * D:])
        h_gru = (1 - z) * n + z * h
        gl = (jnp.dot(xzb, lw_ih.T, preferred_element_type=jnp.float32) + p["lstm_b_ih"]
              + jnp.dot(hb, lw_hh.T, preferred_element_type=jnp.float32) + p["lstm_b_hh"])
        i_g = jax.nn.sigmoid(gl[:, :D])
        f_g = jax.nn.sigmoid(gl[:, D:2 * D])
        g_g = jnp.tanh(gl[:, 2 * D:3 * D])
        o_g = jax.nn.sigmoid(gl[:, 3 * D:])
        c_new = f_g * c + i_g * g_g
        h_new = p["alpha"] * h_gru + p["alpha"] * (o_g * jnp.tanh(c_new))
        return (h_new, c_new), (h_new, c_new)

    xz_seq = jnp.concatenate([x_seq, z_seq], axis=-1)
    _, (h_seq, c_seq) = jax.lax.scan(step, (h0, c0), xz_seq)
    return h_seq, c_seq


# ---------------------------------------------------------------------------
if __name__ == "__main__":
    B, D, T = 8, 32, 16   # batch, latent_dim, sequence length

    key = jax.random.PRNGKey(0)
    kx, kz, kh, kc, kp, kxs, kzs = jax.random.split(key, 7)
    x_enc = jax.random.normal(kx, (B, D), jnp.float32)
    z_enc = jax.random.normal(kz, (B, D), jnp.float32)
    h = jax.random.normal(kh, (B, D), jnp.float32)
    c = jax.random.normal(kc, (B, D), jnp.float32)
    x_seq = jax.random.normal(kxs, (T, B, D), jnp.float32)
    z_seq = jax.random.normal(kzs, (T, B, D), jnp.float32)

    params = init_params(kp, D)
    prep = prepare_params(params)   # one-time fusion/reorder/pad/cast

    # --- single step (matches the PyTorch module forward) ---
    h_new, c_new = hybrid_state_update(x_enc, z_enc, h, c, prep)
    jax.block_until_ready((h_new, c_new))
    h_ref, c_ref = _reference_step(x_enc, z_enc, h, c, params)
    # Tolerances relaxed for bf16 MXU inputs (f32 accumulation / f32 gate math).
    assert jnp.allclose(h_new, h_ref, atol=3e-2, rtol=3e-2), "h mismatch (step)"
    assert jnp.allclose(c_new, c_ref, atol=3e-2, rtol=3e-2), "c mismatch (step)"

    # --- in-kernel time loop (weights VMEM-resident across T steps) ---
    h_seq, c_seq = hybrid_state_scan(x_seq, z_seq, h, c, prep)
    jax.block_until_ready((h_seq, c_seq))
    h_seq_ref, c_seq_ref = _reference_scan_bf16(x_seq, z_seq, h, c, params)
    assert jnp.allclose(h_seq, h_seq_ref, atol=5e-3, rtol=5e-3), "h mismatch (scan)"
    assert jnp.allclose(c_seq, c_seq_ref, atol=5e-3, rtol=5e-3), "c mismatch (scan)"

    print("KERNEL_OK")
</pallas_src>

<mosaic_0001>
module attributes {stable_mosaic.version = 11 : i64} {
  func.func @_hybrid_step_kernel(%arg0: memref<8x96xbf16, #tpu.memory_space<vmem>>, %arg1: memref<8x128xf32, #tpu.memory_space<vmem>>, %arg2: memref<8x128xf32, #tpu.memory_space<vmem>>, %arg3: memref<96x1024xbf16, #tpu.memory_space<vmem>>, %arg4: memref<1x1024xf32, #tpu.memory_space<vmem>>, %arg5: memref<1x1xf32, #tpu.memory_space<smem>>, %arg6: memref<2x8x128xf32, #tpu.memory_space<vmem>>) attributes {dimension_semantics = [], scalar_prefetch = 0 : i64, scratch_operands = 0 : i64, tpu.core_type = #tpu.core_type<tc>} {
    %c0 = arith.constant 0 : index
    %c0_0 = arith.constant 0 : index
    %0 = vector.load %arg0[%c0, %c0_0] : memref<8x96xbf16, #tpu.memory_space<vmem>>, vector<8x96xbf16>
    %c0_1 = arith.constant 0 : index
    %c0_2 = arith.constant 0 : index
    %1 = vector.load %arg3[%c0_1, %c0_2] : memref<96x1024xbf16, #tpu.memory_space<vmem>>, vector<96x1024xbf16>
    %cst = arith.constant dense<0.000000e+00> : vector<8x1024xf32>
    %2 = tpu.matmul %0, %1, %cst {dimension_numbers = #tpu.dot_dimension_numbers<[1], [0], [0], [1], [0, 0, 1, 1], [], []>} : vector<8x96xbf16>, vector<96x1024xbf16>, vector<8x1024xf32> -> vector<8x1024xf32>
    %c0_3 = arith.constant 0 : index
    %c0_4 = arith.constant 0 : index
    %3 = vector.load %arg4[%c0_3, %c0_4] : memref<1x1024xf32, #tpu.memory_space<vmem>>, vector<1x1024xf32>
    %4 = vector.broadcast %3 : vector<1x1024xf32> to vector<8x1024xf32>
    %5 = arith.addf %2, %4 : vector<8x1024xf32>
    %c0_5 = arith.constant 0 : index
    %c0_6 = arith.constant 0 : index
    %6 = vector.load %arg1[%c0_5, %c0_6] : memref<8x128xf32, #tpu.memory_space<vmem>>, vector<8x128xf32>
    %c0_7 = arith.constant 0 : index
    %c0_8 = arith.constant 0 : index
    %7 = vector.load %arg2[%c0_7, %c0_8] : memref<8x128xf32, #tpu.memory_space<vmem>>, vector<8x128xf32>
    %c0_9 = arith.constant 0 : index
    %c0_10 = arith.constant 0 : index
    %8 = memref.load %arg5[%c0_9, %c0_10] : memref<1x1xf32, #tpu.memory_space<smem>>
    %9 = vector.extract_strided_slice %5 {offsets = [0, 0], sizes = [8, 640], strides = [1, 1]} : vector<8x1024xf32> to vector<8x640xf32>
    %10 = arith.negf %9 : vector<8x640xf32>
    %11 = math.exp %10 : vector<8x640xf32>
    %cst_11 = arith.constant 1.000000e+00 : f32
    %12 = vector.broadcast %cst_11 : f32 to vector<8x640xf32>
    %13 = arith.addf %12, %11 : vector<8x640xf32>
    %14 = arith.divf %12, %13 : vector<8x640xf32>
    %15 = vector.extract_strided_slice %14 {offsets = [0, 0], sizes = [8, 128], strides = [1, 1]} : vector<8x640xf32> to vector<8x128xf32>
    %16 = vector.extract_strided_slice %14 {offsets = [0, 128], sizes = [8, 128], strides = [1, 1]} : vector<8x640xf32> to vector<8x128xf32>
    %17 = vector.extract_strided_slice %14 {offsets = [0, 256], sizes = [8, 128], strides = [1, 1]} : vector<8x640xf32> to vector<8x128xf32>
    %18 = vector.extract_strided_slice %14 {offsets = [0, 384], sizes = [8, 128], strides = [1, 1]} : vector<8x640xf32> to vector<8x128xf32>
    %19 = vector.extract_strided_slice %14 {offsets = [0, 512], sizes = [8, 128], strides = [1, 1]} : vector<8x640xf32> to vector<8x128xf32>
    %20 = vector.extract_strided_slice %5 {offsets = [0, 640], sizes = [8, 128], strides = [1, 1]} : vector<8x1024xf32> to vector<8x128xf32>
    %21 = math.tanh %20 : vector<8x128xf32>
    %22 = vector.extract_strided_slice %5 {offsets = [0, 768], sizes = [8, 128], strides = [1, 1]} : vector<8x1024xf32> to vector<8x128xf32>
    %23 = vector.extract_strided_slice %5 {offsets = [0, 896], sizes = [8, 128], strides = [1, 1]} : vector<8x1024xf32> to vector<8x128xf32>
    %24 = arith.mulf %15, %23 : vector<8x128xf32>
    %25 = arith.addf %22, %24 : vector<8x128xf32>
    %26 = math.tanh %25 : vector<8x128xf32>
    %cst_12 = arith.constant 1.000000e+00 : f32
    %27 = vector.broadcast %cst_12 : f32 to vector<8x128xf32>
    %28 = arith.subf %27, %16 : vector<8x128xf32>
    %29 = arith.mulf %28, %26 : vector<8x128xf32>
    %30 = arith.mulf %16, %6 : vector<8x128xf32>
    %31 = arith.addf %29, %30 : vector<8x128xf32>
    %32 = arith.mulf %18, %7 : vector<8x128xf32>
    %33 = arith.mulf %17, %21 : vector<8x128xf32>
    %34 = arith.addf %32, %33 : vector<8x128xf32>
    %35 = math.tanh %34 : vector<8x128xf32>
    %36 = arith.mulf %19, %35 : vector<8x128xf32>
    %37 = arith.addf %31, %36 : vector<8x128xf32>
    %38 = vector.broadcast %8 : f32 to vector<8x128xf32>
    %39 = arith.mulf %38, %37 : vector<8x128xf32>
    %c0_13 = arith.constant 0 : index
    %c0_14 = arith.constant 0 : index
    %c0_15 = arith.constant 0 : index
    %40 = vector.load %arg6[%c0_13, %c0_14, %c0_15] : memref<2x8x128xf32, #tpu.memory_space<vmem>>, vector<1x8x128xf32>
    %41 = vector.shape_cast %40 : vector<1x8x128xf32> to vector<8x128xf32>
    %42 = vector.shape_cast %39 : vector<8x128xf32> to vector<1x8x128xf32>
    tpu.vector_store %arg6[%c0_13, %c0_14, %c0_15], %42 {strides = array<i32>} : memref<2x8x128xf32, #tpu.memory_space<vmem>>, vector<1x8x128xf32>,
    %c1 = arith.constant 1 : index
    %c0_16 = arith.constant 0 : index
    %c0_17 = arith.constant 0 : index
    %43 = vector.load %arg6[%c1, %c0_16, %c0_17] : memref<2x8x128xf32, #tpu.memory_space<vmem>>, vector<1x8x128xf32>
    %44 = vector.shape_cast %43 : vector<1x8x128xf32> to vector<8x128xf32>
    %45 = vector.shape_cast %34 : vector<8x128xf32> to vector<1x8x128xf32>
    tpu.vector_store %arg6[%c1, %c0_16, %c0_17], %45 {strides = array<i32>} : memref<2x8x128xf32, #tpu.memory_space<vmem>>, vector<1x8x128xf32>,
    return
  }
}

</mosaic_0001>

<bundles_post_ra>
// kernel: hybrid_state_update.1
= control target key start
LH: loop header
LB: loop body
LE: loop exit
PB: predicated region body
PF: predicated region fallthrough
CT: control target
= control target key end

     0   :  { %12 = vsyncpa [#allocation4], 0  ;;  %s705_s21 = smov [#allocation3]   ;;  %s782_s0 = inlined_call_operand.vmem [shape: bf16[8,96], index: 0, kind: input, shape index: {}]   ;;  %s783_s1 = inlined_call_operand.vmem [shape: f32[8,128], index: 1, kind: input, shape index: {}]   ;;  %s784_s2 = inlined_call_operand.vmem [shape: f32[8,128], index: 2, kind: input, shape index: {}]   ;;  %s785_s3 = inlined_call_operand.hbm [shape: bf16[96,1024], index: 3, kind: input, shape index: {}]   ;;  %s786_s4 = inlined_call_operand.vmem [shape: f32[1,1024], index: 4, kind: input, shape index: {}]   ;;  %s787_s5 = inlined_call_operand.<no memory space> [shape: f32[1,1], index: 5, kind: input, shape index: {}]   ;;  %s788_s6 = inlined_call_operand.vmem [shape: f32[2,8,128], index: 6, kind: output, shape index: {}]  }
   0x1   :  { %s24_s22 = sshll.u32 %s705_s21, 4  ;;  %s25_s22 = int_to_ptr.vmem [resolvable:$true] %s24_s22 }
   0x2   :  { %s691_s23 = scalar_lea.vmem %s25_s22, 6144  ;;  %p696_p1 = scmp.lt.s32.totalorder %s25_s22, %s25_s22 }
   0x3   :  { %p692_p0 = scmp.ne.s32.totalorder %s25_s22, %s691_s23  ;;  %p697_p2 = scmp.lt.s32.totalorder %s691_s23, %s691_s23 }
   0x5   :  { %p698_p3 = por %p697_p2, %p696_p1 }
   0x7   :  { %p699_p4 = pnand %p698_p3, %p692_p0 }
   0x9   :  { %702 = shalt.err (!%p699_p4)
}
   0xa   :  { %s706_s24 = smov 512   ;;  %s707_s25 = smov 32  }
   0xb   :  { %30 = dma.hbm_to_vmem [thread:$0]  %s785_s3, 6144, %s25_s22, [#allocation4], %s706_s24, %s706_s24, %s707_s25  }
   0xc   :  { %703 = dma.done.wait [#allocation4], 6144  }
   0xd   :  { %704 = vsyncadd [#allocation4], 4294961152  ;;  %v708_v0 = vmov 0   ;;  %v80_v1 = vld [vmem:[#allocation3 + $0x140] sm:$0xff]  ;;  %v81_v3 = vld [vmem:[#allocation3 + $0x148] sm:$0xff]  ;;  %vm370_vm0 = vcmask 785408  }
   0xe   :  { %406 = vmatprep.mubr.bf16.mxu0 %v708_v0  ;;  %447 = vmatprep.mubr.bf16.mxu1 %v708_v0  ;;  %v84_v2 = vld [vmem:[#allocation3 + $0x160] sm:$0xff]  ;;  %v85_v5 = vld [vmem:[#allocation3 + $0x168] sm:$0xff]  ;;  %v82_v47 = vld [vmem:[#allocation3 + $0x150] sm:$0xff] }
   0xf   :  { %v636_v4 = vcombine.high %v80_v1, %v84_v2  ;;  %v635_v6 = vcombine.low %v80_v1, %v84_v2  ;;  %v72_v7 = vld [vmem:[#allocation3 + $0x100] sm:$0xff]  ;;  %v638_v9 = vcombine.high %v81_v3, %v85_v5  ;;  %v637_v10 = vcombine.low %v81_v3, %v85_v5  ;;  %v73_v12 = vld [vmem:[#allocation3 + $0x108] sm:$0xff]  ;;  %v86_v48 = vld [vmem:[#allocation3 + $0x170] sm:$0xff] }
  0x10   :  { %v76_v8 = vld [vmem:[#allocation3 + $0x120] sm:$0xff]  ;;  %v77_v13 = vld [vmem:[#allocation3 + $0x128] sm:$0xff]  ;;  %v83_v49 = vld [vmem:[#allocation3 + $0x158] sm:$0xff]  ;;  %v640_v53 = vcombine.high %v82_v47, %v86_v48  ;;  %v639_v60 = vcombine.low %v82_v47, %v86_v48 }
  0x11   :  { %v628_v11 = vcombine.high %v72_v7, %v76_v8  ;;  %v64_v14 = vld [vmem:[#allocation3 + $0xc0] sm:$0xff]  ;;  %378 = vmatprep.subr.bf16.mxu0 %v636_v4  ;;  %v630_v15 = vcombine.high %v73_v12, %v77_v13  ;;  %v65_v17 = vld [vmem:[#allocation3 + $0xc8] sm:$0xff]  ;;  %419 = vmatprep.subr.bf16.mxu1 %v638_v9  ;;  %v627_v19 = vcombine.low %v72_v7, %v76_v8  ;;  %v87_v50 = vld [vmem:[#allocation3 + $0x178] sm:$0xff] }
  0x12   :  { %v68_v16 = vld [vmem:[#allocation3 + $0xe0] sm:$0xff]  ;;  %v69_v18 = vld [vmem:[#allocation3 + $0xe8] sm:$0xff]  ;;  %379 = vmatpush1.bf16.msra.mxu0 %v635_v6  ;;  %420 = vmatpush1.bf16.msra.mxu1 %v637_v10  ;;  %v629_v20 = vcombine.low %v73_v12, %v77_v13  ;;  %v74_v54 = vld [vmem:[#allocation3 + $0x110] sm:$0xff]  ;;  %v642_v56 = vcombine.high %v83_v49, %v87_v50  ;;  %v641_v62 = vcombine.low %v83_v49, %v87_v50 }
  0x13   :  { %380 = vmatprep.subr.bf16.mxu0 %v628_v11  ;;  %v620_v21 = vcombine.high %v64_v14, %v68_v16  ;;  %421 = vmatprep.subr.bf16.mxu1 %v630_v15  ;;  %v622_v22 = vcombine.high %v65_v17, %v69_v18  ;;  %v56_v23 = vld [vmem:[#allocation3 + $0x80] sm:$0xff]  ;;  %v57_v25 = vld [vmem:[#allocation3 + $0x88] sm:$0xff]  ;;  %v619_v27 = vcombine.low %v64_v14, %v68_v16  ;;  %v78_v55 = vld [vmem:[#allocation3 + $0x130] sm:$0xff] }
  0x14   :  { %v60_v24 = vld [vmem:[#allocation3 + $0xa0] sm:$0xff]  ;;  %v61_v26 = vld [vmem:[#allocation3 + $0xa8] sm:$0xff]  ;;  %v621_v28 = vcombine.low %v65_v17, %v69_v18  ;;  %v75_v57 = vld [vmem:[#allocation3 + $0x118] sm:$0xff]  ;;  %v632_v61 = vcombine.high %v74_v54, %v78_v55  ;;  %v631_v5 = vcombine.low %v74_v54, %v78_v55 }
  0x15   :  { %v612_v29 = vcombine.high %v56_v23, %v60_v24  ;;  %v614_v30 = vcombine.high %v57_v25, %v61_v26  ;;  %v48_v31 = vld [vmem:[#allocation3 + $0x40] sm:$0xff]  ;;  %v49_v33 = vld [vmem:[#allocation3 + $0x48] sm:$0xff]  ;;  %v611_v35 = vcombine.low %v56_v23, %v60_v24  ;;  %v613_v36 = vcombine.low %v57_v25, %v61_v26  ;;  %v79_v58 = vld [vmem:[#allocation3 + $0x138] sm:$0xff] }
  0x16   :  { %381 = vmatpush1.bf16.msra.mxu0 %v627_v19  ;;  %422 = vmatpush1.bf16.msra.mxu1 %v629_v20  ;;  %v52_v32 = vld [vmem:[#allocation3 + $0x60] sm:$0xff]  ;;  %v53_v34 = vld [vmem:[#allocation3 + $0x68] sm:$0xff]  ;;  %v66_v63 = vld [vmem:[#allocation3 + $0xd0] sm:$0xff]  ;;  %v634_v2 = vcombine.high %v75_v57, %v79_v58  ;;  %v633_v7 = vcombine.low %v75_v57, %v79_v58 }
  0x17   :  { %382 = vmatprep.subr.bf16.mxu0 %v620_v21  ;;  %423 = vmatprep.subr.bf16.mxu1 %v622_v22  ;;  %v604_v37 = vcombine.high %v48_v31, %v52_v32  ;;  %v606_v38 = vcombine.high %v49_v33, %v53_v34  ;;  %v40_v39 = vld [vmem:[#allocation3] sm:$0xff]  ;;  %v41_v41 = vld [vmem:[#allocation3 + $0x8] sm:$0xff]  ;;  %v603_v43 = vcombine.low %v48_v31, %v52_v32  ;;  %v70_v1 = vld [vmem:[#allocation3 + $0xf0] sm:$0xff] }
  0x18   :  { %v44_v40 = vld [vmem:[#allocation3 + $0x20] sm:$0xff]  ;;  %v45_v42 = vld [vmem:[#allocation3 + $0x28] sm:$0xff]  ;;  %v605_v44 = vcombine.low %v49_v33, %v53_v34  ;;  %v67_v3 = vld [vmem:[#allocation3 + $0xd8] sm:$0xff]  ;;  %v624_v6 = vcombine.high %v66_v63, %v70_v1  ;;  %v623_v13 = vcombine.low %v66_v63, %v70_v1  ;;  %v90_v34 = vlaneseq }
  0x19   :  { %v596_v45 = vcombine.high %v40_v39, %v44_v40  ;;  %v598_v46 = vcombine.high %v41_v41, %v45_v42  ;;  %v595_v51 = vcombine.low %v40_v39, %v44_v40  ;;  %v597_v52 = vcombine.low %v41_v41, %v45_v42  ;;  %v752_v59 = vld [vmem:[%s782_s0] sm:$0xf]  ;;  %v71_v4 = vld [vmem:[#allocation3 + $0xf8] sm:$0xff]  ;;  %v58_v8 = vld [vmem:[#allocation3 + $0x90] sm:$0xff] }
  0x1a   :  { %383 = vmatpush1.bf16.msra.mxu0 %v619_v27  ;;  %424 = vmatpush1.bf16.msra.mxu1 %v621_v28  ;;  %v62_v9 = vld [vmem:[#allocation3 + $0xb0] sm:$0xff]  ;;  %v626_v10 = vcombine.high %v67_v3, %v71_v4  ;;  %v59_v11 = vld [vmem:[#allocation3 + $0x98] sm:$0xff]  ;;  %v625_v15 = vcombine.low %v67_v3, %v71_v4 }
  0x1b   :  { %384 = vmatprep.subr.bf16.mxu0 %v612_v29  ;;  %425 = vmatprep.subr.bf16.mxu1 %v614_v30  ;;  %v63_v12 = vld [vmem:[#allocation3 + $0xb8] sm:$0xff]  ;;  %v616_v14 = vcombine.high %v58_v8, %v62_v9  ;;  %v50_v16 = vld [vmem:[#allocation3 + $0x50] sm:$0xff]  ;;  %v615_v21 = vcombine.low %v58_v8, %v62_v9 }
  0x1c   :  { %v54_v17 = vld [vmem:[#allocation3 + $0x70] sm:$0xff]  ;;  %v618_v18 = vcombine.high %v59_v11, %v63_v12  ;;  %v51_v19 = vld [vmem:[#allocation3 + $0x58] sm:$0xff]  ;;  %v617_v23 = vcombine.low %v59_v11, %v63_v12 }
  0x1d   :  { %v55_v20 = vld [vmem:[#allocation3 + $0x78] sm:$0xff]  ;;  %v608_v22 = vcombine.high %v50_v16, %v54_v17  ;;  %v46_v24 = vld [vmem:[#allocation3 + $0x30] sm:$0xff]  ;;  %v607_v28 = vcombine.low %v50_v16, %v54_v17 }
  0x1e   :  { %385 = vmatpush1.bf16.msra.mxu0 %v611_v35  ;;  %426 = vmatpush1.bf16.msra.mxu1 %v613_v36  ;;  %v610_v25 = vcombine.high %v51_v19, %v55_v20  ;;  %v43_v26 = vld [vmem:[#allocation3 + $0x18] sm:$0xff]  ;;  %v609_v30 = vcombine.low %v51_v19, %v55_v20  ;;  %v91_v35 = vshrl.u32 %v90_v34, 7 }
  0x1f   :  { %386 = vmatprep.subr.bf16.mxu0 %v604_v37  ;;  %427 = vmatprep.subr.bf16.mxu1 %v606_v38  ;;  %v47_v27 = vld [vmem:[#allocation3 + $0x38] sm:$0xff]  ;;  %v88_v37 = vld [vmem:[%s786_s4] sm:$0xff] }
  0x20   :  { %v602_v31 = vcombine.high %v43_v26, %v47_v27  ;;  %v601_v33 = vcombine.low %v43_v26, %v47_v27  ;;  %v92_v36 = vsub.s32 0, %v91_v35  ;;  %v100_v38 = vsub.s32 2, %v91_v35 }
  0x21   :  { %v104_v39 = vsub.s32 3, %v91_v35  ;;  %v112_v1 = vsub.s32 5, %v91_v35 }
  0x22   :  { %387 = vmatpush1.bf16.msra.mxu0 %v603_v43  ;;  %428 = vmatpush1.bf16.msra.mxu1 %v605_v44  ;;  %v93_v40 = vrot.slane %v88_v37, %v92_v36  ;;  %v101_v41 = vrot.slane %v88_v37, %v100_v38 }
  0x23   :  { %388 = vmatprep.subr.bf16.mxu0 %v596_v45  ;;  %429 = vmatprep.subr.bf16.mxu1 %v598_v46  ;;  %v105_v43 = vrot.slane %v88_v37, %v104_v39 }
  0x26   :  { %389 = vmatpush1.bf16.msra.mxu0 %v595_v51  ;;  %430 = vmatpush1.bf16.msra.mxu1 %v597_v52  ;;  %v96_v51 = vsub.s32 1, %v91_v35 }
  0x27   :  { %460 = vmatprep.subr.bf16.mxu0 %v640_v53  ;;  %501 = vmatprep.subr.bf16.mxu1 %v642_v56 }
  0x28   :  { %v97_v58 = vrot.slane %v88_v37, %v96_v51 }
  0x29   :  { %643 = vmatmul.mubr.msk.bf16.vlgmr.msra.gmra.mxu0 %vm370_vm0, %v752_v59  ;;  %644 = vmatmul.mubr.msk.bf16.vlgmr.msra.gmra.mxu1 %vm370_vm0, %v752_v59 }
  0x2a   :  { %461 = vmatpush1.bf16.msra.mxu0 %v639_v60  ;;  %502 = vmatpush1.bf16.msra.mxu1 %v641_v62 }
  0x2b   :  { %462 = vmatprep.subr.bf16.mxu0 %v632_v61  ;;  %503 = vmatprep.subr.bf16.mxu1 %v634_v2  ;;  %v108_v61 = vsub.s32 4, %v91_v35 }
  0x2c   :  { %488 = vmatprep.mubr.bf16.mxu0 %v708_v0  ;;  %529 = vmatprep.mubr.bf16.mxu1 %v708_v0  ;;  %v42_v0 = vld [vmem:[#allocation3 + $0x10] sm:$0xff] }
  0x2d   :  { %v600_v29 = vcombine.high %v42_v0, %v46_v24  ;;  %v599_v32 = vcombine.low %v42_v0, %v46_v24  ;;  %v109_v4 = vrot.slane %v88_v37, %v108_v61 }
  0x2e   :  { %463 = vmatpush1.bf16.msra.mxu0 %v631_v5  ;;  %504 = vmatpush1.bf16.msra.mxu1 %v633_v7  ;;  %v120_v7 = vsub.s32 7, %v91_v35 }
  0x2f   :  { %464 = vmatprep.subr.bf16.mxu0 %v624_v6  ;;  %505 = vmatprep.subr.bf16.mxu1 %v626_v10  ;;  %v113_v6 = vrot.slane %v88_v37, %v112_v1 }
  0x30   :  { %v121_v16 = vrot.slane %v88_v37, %v120_v7 }
  0x32   :  { %465 = vmatpush1.bf16.msra.mxu0 %v623_v13  ;;  %506 = vmatpush1.bf16.msra.mxu1 %v625_v15  ;;  %v116_v13 = vsub.s32 6, %v91_v35 }
  0x33   :  { %466 = vmatprep.subr.bf16.mxu0 %v616_v14  ;;  %507 = vmatprep.subr.bf16.mxu1 %v618_v18 }
  0x36   :  { %467 = vmatpush1.bf16.msra.mxu0 %v615_v21  ;;  %508 = vmatpush1.bf16.msra.mxu1 %v617_v23  ;;  %v117_v21 = vrot.slane %v88_v37, %v116_v13 }
  0x37   :  { %468 = vmatprep.subr.bf16.mxu0 %v608_v22  ;;  %509 = vmatprep.subr.bf16.mxu1 %v610_v25 }
  0x3a   :  { %469 = vmatpush1.bf16.msra.mxu0 %v607_v28  ;;  %510 = vmatpush1.bf16.msra.mxu1 %v609_v30 }
  0x3b   :  { %470 = vmatprep.subr.bf16.mxu0 %v600_v29  ;;  %511 = vmatprep.subr.bf16.mxu1 %v602_v31  ;;  %v539_v31 = vld [vmem:[%s784_s2] sm:$0xff] }
  0x3e   :  { %471 = vmatpush1.bf16.msra.mxu0 %v599_v32  ;;  %512 = vmatpush1.bf16.msra.mxu1 %v601_v33 }
  0x41   :  { %645 = vmatmul.mubr.msk.bf16.vlgmr.msra.gmra.mxu0 %vm370_vm0, %v752_v59  ;;  %646 = vmatmul.mubr.msk.bf16.vlgmr.msra.gmra.mxu1 %vm370_vm0, %v752_v59 }
  0xe9   :  { %v408_v42 = vpop.f32.mrf.mxu0  ;;  %v449_v45 = vpop.f32.mrf.mxu1 }
  0xea   :  { %v409_v44 = vadd.f32 %v408_v42, %v93_v40  ;;  %v450_v46 = vadd.f32 %v449_v45, %v101_v41  ;;  %v538_v41 = vld [vmem:[%s783_s1] sm:$0xff] }
  0xeb   :  { %v410_v47 = vpop.f32.mrf.mxu0  ;;  %v451_v49 = vpop.f32.mrf.mxu1 }
  0xec   :  { %v647_v48 = vmul.f32 -1.442695, %v409_v44  ;;  %v649_v50 = vmul.f32 -1.442695, %v450_v46  ;;  %v452_v52 = vadd.f32 %v451_v49, %v105_v43  ;;  %v411_v59 = vadd.f32 %v410_v47, %v97_v58 }
  0xed   :  { %v412_v53 = vpop.f32.mrf.mxu0  ;;  %v453_v54 = vpop.f32.mrf.mxu1 }
  0xee   :  { %657 = vpow2.f32 %v647_v48  ;;  %v650_v55 = vmul.f32 -1.442695, %v452_v52  ;;  %v648_v60 = vmul.f32 -1.442695, %v411_v59  ;;  %v585_v48 = vstv %s787_s5 }
  0xef   :  { %v413_v56 = vpop.f32.mrf.mxu0  ;;  %659 = vpow2.f32 %v649_v50  ;;  %v454_v57 = vpop.f32.mrf.mxu1 }
  0xf0   :  { %661 = vpow2.f32 %v650_v55 }
  0xf1   :  { %663 = vpow2.f32 %v648_v60 }
  0xfb   :  { %v658_v62 = vpop.eup %657 }
  0xfc   :  { %v556_v63 = vadd.f32 1.0, %v658_v62  ;;  %v660_v2 = vpop.eup %659 }
  0xfd   :  { %v662_v3 = vpop.eup %661  ;;  %v558_v5 = vadd.f32 1.0, %v660_v2 }
  0xfe   :  { %665 = vrcp.f32 %v556_v63  ;;  %v559_v8 = vadd.f32 1.0, %v662_v3  ;;  %v664_v0 = vpop.eup %663 }
  0xff   :  { %667 = vrcp.f32 %v558_v5  ;;  %v557_v27 = vadd.f32 1.0, %v664_v0 }
 0x100   :  { %669 = vrcp.f32 %v559_v8 }
 0x101   :  { %v490_v9 = vpop.f32.mrf.mxu0  ;;  %v531_v11 = vpop.f32.mrf.mxu1 }
 0x102   :  { %v491_v10 = vadd.f32 %v490_v9, %v109_v4  ;;  %v532_v25 = vadd.f32 %v531_v11, %v117_v21 }
 0x103   :  { %v492_v12 = vpop.f32.mrf.mxu0  ;;  %v533_v17 = vpop.f32.mrf.mxu1 }
 0x104   :  { %v651_v14 = vmul.f32 -1.442695, %v491_v10  ;;  %v493_v15 = vadd.f32 %v492_v12, %v113_v6  ;;  %v534_v22 = vadd.f32 %v533_v17, %v121_v16 }
 0x105   :  { %v494_v18 = vpop.f32.mrf.mxu0  ;;  %v535_v19 = vpop.f32.mrf.mxu1 }
 0x106   :  { %671 = vpow2.f32 %v651_v14 }
 0x107   :  { %673 = vtanh.f32 %v493_v15  ;;  %v495_v20 = vpop.f32.mrf.mxu0  ;;  %v536_v23 = vpop.f32.mrf.mxu1 }
 0x108   :  { %675 = vrcp.f32 %v557_v27 }
 0x10b   :  { %v666_v24 = vpop.eup %665 }
 0x10c   :  { %v572_v26 = vmul.f32 %v666_v24, %v534_v22  ;;  %v668_v29 = vpop.eup %667 }
 0x10d   :  { %v670_v30 = vpop.eup %669 }
 0x10e   :  { %v573_v28 = vadd.f32 %v572_v26, %v532_v25  ;;  %v579_v35 = vmul.f32 %v670_v30, %v539_v31 }
 0x110   :  { %677 = vtanh.f32 %v573_v28 }
 0x113   :  { %v672_v32 = vpop.eup %671 }
 0x114   :  { %v674_v33 = vpop.eup %673  ;;  %v560_v34 = vadd.f32 1.0, %v672_v32 }
 0x115   :  { %v580_v36 = vmul.f32 %v674_v33, %v668_v29  ;;  %v676_v38 = vpop.eup %675 }
 0x116   :  { %679 = vrcp.f32 %v560_v34  ;;  %v575_v40 = vsub.f32 1.0, %v676_v38  ;;  %v577_v44 = vmul.f32 %v676_v38, %v538_v41 }
 0x117   :  { %v581_v37 = vadd.f32 %v580_v36, %v579_v35 }
 0x119   :  { %681 = vtanh.f32 %v581_v37  ;;  %652 = vst [vmem:[%s788_s6 + $0x8] sm:$0xff] %v581_v37 }
 0x11d   :  { %v678_v39 = vpop.eup %677 }
 0x11e   :  { %v576_v42 = vmul.f32 %v678_v39, %v575_v40 }
 0x120   :  { %v578_v46 = vadd.f32 %v577_v44, %v576_v42 }
 0x123   :  { %v680_v43 = vpop.eup %679 }
 0x126   :  { %v682_v45 = vpop.eup %681 }
 0x127   :  { %v583_v47 = vmul.f32 %v682_v45, %v680_v43 }
 0x129   :  { %v584_v49 = vadd.f32 %v583_v47, %v578_v46 }
 0x12b   :  { %v586_v50 = vmul.f32 %v585_v48, %v584_v49 }
 0x12d   :  { %587 = vst [vmem:[%s788_s6] sm:$0xff] %v586_v50 }
 0x12e   :  { %594 = vsyncpa [#allocation4], 1 }

</bundles_post_ra>
